<compile_context>
chip_gen: v7x
topology: tpu7x:2x2x1
jax: 0.10.0
libtpu: 0.0.40
codegen_flags: <defaults>
</compile_context>

<pallas_src>
import functools

import jax
import jax.numpy as jnp
from jax.experimental import pallas as pl
from jax.experimental.pallas import tpu as pltpu


# ---------------------------------------------------------------------------
# Fused Pallas kernel: one-hot embedding gather + n_layers LSTM cells + fc_out
# ---------------------------------------------------------------------------

def _fused_decoder_kernel(n_layers, tok_ref, emb_ref, h_ref, c_ref, *rest):
    """Single-timestep decoder forward.

    tok_ref : [B, 1]        int32  token ids (VMEM)
    emb_ref : [V, E]        f32    embedding table
    h_ref   : [L, B, H]     f32
    c_ref   : [L, B, H]     f32
    rest    : per layer l: wih [in_l, 4H], whh [H, 4H], b [1, 4H]
              then fc_w [H, V], fc_b [1, V]
              then outputs: pred [B, V], h_out [L, B, H], c_out [L, B, H]
    """
    nw = 3 * n_layers
    layer_refs = rest[:nw]
    fc_w_ref = rest[nw]
    fc_b_ref = rest[nw + 1]
    pred_ref = rest[nw + 2]
    h_out_ref = rest[nw + 3]
    c_out_ref = rest[nw + 4]

    B = h_ref.shape[1]
    H = h_ref.shape[2]
    V = emb_ref.shape[0]

    # ---- embedding gather as a one-hot MXU matmul (no serial row loads).
    tok = tok_ref[...]                                        # [B, 1] int32
    col = jax.lax.broadcasted_iota(jnp.int32, (B, V), 1)      # [B, V]
    onehot = (col == tok).astype(jnp.float32)                 # [B, V]
    x = jnp.dot(onehot, emb_ref[...],
                preferred_element_type=jnp.float32)           # [B, E]
    # dropout(embedded): identity in eval mode.

    new_h = []
    new_c = []
    for l in range(n_layers):                                 # static unroll
        wih_ref = layer_refs[3 * l + 0]   # [in_l, 4H]
        whh_ref = layer_refs[3 * l + 1]   # [H,    4H]
        b_ref = layer_refs[3 * l + 2]     # [1,    4H]
        h_prev = h_ref[l]                 # [B, H]
        c_prev = c_ref[l]                 # [B, H]

        # Lane-dense packed gates: [B, 4H], columns ordered i | f | g | o.
        gates = (jnp.dot(x, wih_ref[...], preferred_element_type=jnp.float32)
                 + jnp.dot(h_prev, whh_ref[...],
                           preferred_element_type=jnp.float32)
                 + b_ref[...])

        sig = jax.nn.sigmoid(gates)       # one EUP pass over all 4H lanes
        tnh = jnp.tanh(gates)             # one EUP pass over all 4H lanes
        i_g = sig[:, 0 * H:1 * H]
        f_g = sig[:, 1 * H:2 * H]
        g_g = tnh[:, 2 * H:3 * H]
        o_g = sig[:, 3 * H:4 * H]

        c_new = f_g * c_prev + i_g * g_g
        h_new = o_g * jnp.tanh(c_new)
        new_h.append(h_new)
        new_c.append(c_new)
        x = h_new                         # inter-layer dropout: identity (eval)

    # Coalesced state writeback: one [L, B, H] store per state tensor.
    h_out_ref[...] = jnp.stack(new_h, axis=0)
    c_out_ref[...] = jnp.stack(new_c, axis=0)

    # ---- fc_out on the top-layer hidden state.
    pred_ref[...] = (jnp.dot(x, fc_w_ref[...],
                             preferred_element_type=jnp.float32)
                     + fc_b_ref[...])


def _full_spec(shape):
    zeros = (0,) * len(shape)
    return pl.BlockSpec(shape, lambda *_: zeros)


# ---------------------------------------------------------------------------
# Decoder
# ---------------------------------------------------------------------------

class Decoder:
    """JAX/Pallas port of the PyTorch seq2seq Decoder (eval-mode forward)."""

    def __init__(self, output_dim, emb_dim, hid_dim, n_layers, dropout, key):
        self.output_dim = output_dim
        self.emb_dim = emb_dim
        self.hid_dim = hid_dim
        self.n_layers = n_layers
        self.dropout = dropout  # identity in eval mode

        k = 1.0 / jnp.sqrt(jnp.float32(hid_dim))
        keys = jax.random.split(key, 3 + 4 * n_layers)

        # Embedding table (PyTorch default: N(0, 1)).
        self.embedding = jax.random.normal(
            keys[0], (output_dim, emb_dim), dtype=jnp.float32)

        # LSTM weights, packed per layer along the output (gate) dim:
        #   wih [in_dim, 4H], whh [H, 4H], b [1, 4H]  (gate order i|f|g|o).
        self.layer_params = []   # flat: [wih_0, whh_0, b_0, wih_1, whh_1, b_1, ...]
        H = hid_dim
        for layer in range(n_layers):
            in_dim = emb_dim if layer == 0 else hid_dim
            kk = keys[3 + 4 * layer: 3 + 4 * (layer + 1)]
            w_ih = jax.random.uniform(kk[0], (4 * H, in_dim),
                                      minval=-k, maxval=k, dtype=jnp.float32)
            w_hh = jax.random.uniform(kk[1], (4 * H, H),
                                      minval=-k, maxval=k, dtype=jnp.float32)
            b_ih = jax.random.uniform(kk[2], (4 * H,),
                                      minval=-k, maxval=k, dtype=jnp.float32)
            b_hh = jax.random.uniform(kk[3], (4 * H,),
                                      minval=-k, maxval=k, dtype=jnp.float32)
            wih_packed = jnp.transpose(w_ih)              # [in_dim, 4H]
            whh_packed = jnp.transpose(w_hh)              # [H, 4H]
            b = (b_ih + b_hh).reshape(1, 4 * H)           # [1, 4H]
            self.layer_params += [wih_packed, whh_packed, b]

        # fc_out (Linear(hid_dim, output_dim)).
        fc_w = jax.random.uniform(keys[1], (output_dim, hid_dim),
                                  minval=-k, maxval=k, dtype=jnp.float32)
        fc_b = jax.random.uniform(keys[2], (output_dim,),
                                  minval=-k, maxval=k, dtype=jnp.float32)
        self.fc_w_t = jnp.transpose(fc_w)              # [H, V]
        self.fc_b = fc_b.reshape(1, output_dim)        # [1, V]

    def __call__(self, inputs, hidden, cell):
        # inputs: [B] int ;  hidden/cell: [n_layers, B, H]
        B = inputs.shape[0]
        L, _, H = hidden.shape
        V = self.output_dim

        tok = inputs.astype(jnp.int32).reshape(B, 1)
        ops = [tok, self.embedding, hidden, cell, *self.layer_params,
               self.fc_w_t, self.fc_b]
        in_specs = [_full_spec(a.shape) for a in ops]
        out_shape = (jax.ShapeDtypeStruct((B, V), jnp.float32),
                     jax.ShapeDtypeStruct((L, B, H), jnp.float32),
                     jax.ShapeDtypeStruct((L, B, H), jnp.float32))
        out_specs = (_full_spec((B, V)),
                     _full_spec((L, B, H)),
                     _full_spec((L, B, H)))

        fwd = pl.pallas_call(
            functools.partial(_fused_decoder_kernel, self.n_layers),
            out_shape=out_shape,
            grid_spec=pl.GridSpec(
                grid=(1,),
                in_specs=in_specs,
                out_specs=out_specs),
            # arg order: tok(0), emb(1), hidden(2), cell(3), weights...
            # alias hidden->h_out and cell->c_out (in-place state update).
            input_output_aliases={2: 1, 3: 2},
            compiler_params=pltpu.CompilerParams(
                dimension_semantics=("arbitrary",)),
        )
        prediction, hidden_out, cell_out = fwd(*ops)
        return prediction, hidden_out, cell_out


# ---------------------------------------------------------------------------
# Pure-JAX reference for a sanity check
# ---------------------------------------------------------------------------

def _reference_forward(dec, inputs, hidden, cell):
    H = dec.hid_dim
    x = jnp.take(dec.embedding, inputs, axis=0)
    new_h, new_c = [], []
    for l in range(dec.n_layers):
        wih = dec.layer_params[3 * l + 0]
        whh = dec.layer_params[3 * l + 1]
        b = dec.layer_params[3 * l + 2]
        gates = x @ wih + hidden[l] @ whh + b
        i = jax.nn.sigmoid(gates[:, 0 * H:1 * H])
        f = jax.nn.sigmoid(gates[:, 1 * H:2 * H])
        g = jnp.tanh(gates[:, 2 * H:3 * H])
        o = jax.nn.sigmoid(gates[:, 3 * H:4 * H])
        c_new = f * cell[l] + i * g
        h_new = o * jnp.tanh(c_new)
        new_h.append(h_new)
        new_c.append(c_new)
        x = h_new
    pred = x @ dec.fc_w_t + dec.fc_b
    return pred, jnp.stack(new_h), jnp.stack(new_c)


# ---------------------------------------------------------------------------
# Main
# ---------------------------------------------------------------------------

if __name__ == "__main__":
    OUTPUT_DIM = 32   # vocab size
    EMB_DIM = 16
    HID_DIM = 32
    N_LAYERS = 2
    DROPOUT = 0.5     # identity in eval mode
    BATCH = 8

    root = jax.random.PRNGKey(0)
    k_params, k_tok, k_h, k_c = jax.random.split(root, 4)

    decoder = Decoder(OUTPUT_DIM, EMB_DIM, HID_DIM, N_LAYERS, DROPOUT, k_params)

    inputs = jax.random.randint(k_tok, (BATCH,), 0, OUTPUT_DIM, dtype=jnp.int32)
    hidden = jax.random.normal(k_h, (N_LAYERS, BATCH, HID_DIM), dtype=jnp.float32)
    cell = jax.random.normal(k_c, (N_LAYERS, BATCH, HID_DIM), dtype=jnp.float32)

    # Compute the reference first (the fused kernel aliases hidden/cell buffers,
    # so the caller's hidden/cell arrays are donated/clobbered by the call).
    ref_pred, ref_h, ref_c = _reference_forward(decoder, inputs, hidden, cell)
    jax.block_until_ready((ref_pred, ref_h, ref_c))

    prediction, hidden_out, cell_out = decoder(inputs, hidden, cell)
    jax.block_until_ready((prediction, hidden_out, cell_out))

    assert prediction.shape == (BATCH, OUTPUT_DIM)
    assert hidden_out.shape == (N_LAYERS, BATCH, HID_DIM)
    assert cell_out.shape == (N_LAYERS, BATCH, HID_DIM)
    assert jnp.allclose(prediction, ref_pred, atol=1e-5, rtol=1e-5)
    assert jnp.allclose(hidden_out, ref_h, atol=1e-5, rtol=1e-5)
    assert jnp.allclose(cell_out, ref_c, atol=1e-5, rtol=1e-5)

    print("KERNEL_OK")
</pallas_src>

<mosaic_0001>
module attributes {stable_mosaic.version = 11 : i64} {
  func.func @_fused_decoder_kernel(%arg0: i32, %arg1: memref<8x1xi32, #tpu.memory_space<vmem>>, %arg2: memref<32x16xf32, #tpu.memory_space<vmem>>, %arg3: memref<2x8x32xf32, #tpu.memory_space<vmem>>, %arg4: memref<2x8x32xf32, #tpu.memory_space<vmem>>, %arg5: memref<16x128xf32, #tpu.memory_space<vmem>>, %arg6: memref<32x128xf32, #tpu.memory_space<vmem>>, %arg7: memref<1x128xf32, #tpu.memory_space<vmem>>, %arg8: memref<32x128xf32, #tpu.memory_space<vmem>>, %arg9: memref<32x128xf32, #tpu.memory_space<vmem>>, %arg10: memref<1x128xf32, #tpu.memory_space<vmem>>, %arg11: memref<32x32xf32, #tpu.memory_space<vmem>>, %arg12: memref<1x32xf32, #tpu.memory_space<vmem>>, %arg13: memref<8x32xf32, #tpu.memory_space<vmem>>, %arg14: memref<2x8x32xf32, #tpu.memory_space<vmem>>, %arg15: memref<2x8x32xf32, #tpu.memory_space<vmem>>) attributes {dimension_semantics = [#tpu.dimension_semantics<arbitrary>], iteration_bounds = array<i64: 1>, scalar_prefetch = 0 : i64, scratch_operands = 0 : i64, tpu.core_type = #tpu.core_type<tc>, window_params = [{pipeline_mode = #tpu.pipeline_mode<synchronous>, transform_indices = @transform_0, window_bounds = array<i64: 8, 1>}, {pipeline_mode = #tpu.pipeline_mode<synchronous>, transform_indices = @transform_1, window_bounds = array<i64: 32, 16>}, {pipeline_mode = #tpu.pipeline_mode<synchronous>, transform_indices = @transform_2, window_bounds = array<i64: 2, 8, 32>}, {pipeline_mode = #tpu.pipeline_mode<synchronous>, transform_indices = @transform_3, window_bounds = array<i64: 2, 8, 32>}, {pipeline_mode = #tpu.pipeline_mode<synchronous>, transform_indices = @transform_4, window_bounds = array<i64: 16, 128>}, {pipeline_mode = #tpu.pipeline_mode<synchronous>, transform_indices = @transform_5, window_bounds = array<i64: 32, 128>}, {pipeline_mode = #tpu.pipeline_mode<synchronous>, transform_indices = @transform_6, window_bounds = array<i64: 1, 128>}, {pipeline_mode = #tpu.pipeline_mode<synchronous>, transform_indices = @transform_7, window_bounds = array<i64: 32, 128>}, {pipeline_mode = #tpu.pipeline_mode<synchronous>, transform_indices = @transform_8, window_bounds = array<i64: 32, 128>}, {pipeline_mode = #tpu.pipeline_mode<synchronous>, transform_indices = @transform_9, window_bounds = array<i64: 1, 128>}, {pipeline_mode = #tpu.pipeline_mode<synchronous>, transform_indices = @transform_10, window_bounds = array<i64: 32, 32>}, {pipeline_mode = #tpu.pipeline_mode<synchronous>, transform_indices = @transform_11, window_bounds = array<i64: 1, 32>}, {pipeline_mode = #tpu.pipeline_mode<synchronous>, transform_indices = @transform_12, window_bounds = array<i64: 8, 32>}, {pipeline_mode = #tpu.pipeline_mode<synchronous>, transform_indices = @transform_13, window_bounds = array<i64: 2, 8, 32>}, {pipeline_mode = #tpu.pipeline_mode<synchronous>, transform_indices = @transform_14, window_bounds = array<i64: 2, 8, 32>}]} {
    %c0 = arith.constant 0 : index
    %c0_0 = arith.constant 0 : index
    %0 = vector.load %arg1[%c0, %c0_0] : memref<8x1xi32, #tpu.memory_space<vmem>>, vector<8x1xi32>
    %1 = tpu.iota {dimensions = array<i32: 1>} : vector<8x32xi32>
    %2 = vector.broadcast %0 : vector<8x1xi32> to vector<8x32xi32>
    %3 = arith.cmpi eq, %1, %2 : vector<8x32xi32>
    %4 = arith.extui %3 : vector<8x32xi1> to vector<8x32xi32>
    %5 = arith.sitofp %4 : vector<8x32xi32> to vector<8x32xf32>
    %c0_1 = arith.constant 0 : index
    %c0_2 = arith.constant 0 : index
    %6 = vector.load %arg2[%c0_1, %c0_2] : memref<32x16xf32, #tpu.memory_space<vmem>>, vector<32x16xf32>
    %cst = arith.constant dense<0.000000e+00> : vector<8x16xf32>
    %7 = tpu.matmul %5, %6, %cst {dimension_numbers = #tpu.dot_dimension_numbers<[1], [0], [0], [1], [0, 0, 1, 1], [], []>} : vector<8x32xf32>, vector<32x16xf32>, vector<8x16xf32> -> vector<8x16xf32>
    %c0_3 = arith.constant 0 : index
    %c0_4 = arith.constant 0 : index
    %c0_5 = arith.constant 0 : index
    %8 = vector.load %arg3[%c0_3, %c0_4, %c0_5] : memref<2x8x32xf32, #tpu.memory_space<vmem>>, vector<1x8x32xf32>
    %9 = vector.shape_cast %8 : vector<1x8x32xf32> to vector<8x32xf32>
    %c0_6 = arith.constant 0 : index
    %c0_7 = arith.constant 0 : index
    %c0_8 = arith.constant 0 : index
    %10 = vector.load %arg4[%c0_6, %c0_7, %c0_8] : memref<2x8x32xf32, #tpu.memory_space<vmem>>, vector<1x8x32xf32>
    %11 = vector.shape_cast %10 : vector<1x8x32xf32> to vector<8x32xf32>
    %c0_9 = arith.constant 0 : index
    %c0_10 = arith.constant 0 : index
    %12 = vector.load %arg5[%c0_9, %c0_10] : memref<16x128xf32, #tpu.memory_space<vmem>>, vector<16x128xf32>
    %cst_11 = arith.constant dense<0.000000e+00> : vector<8x128xf32>
    %13 = tpu.matmul %7, %12, %cst_11 {dimension_numbers = #tpu.dot_dimension_numbers<[1], [0], [0], [1], [0, 0, 1, 1], [], []>} : vector<8x16xf32>, vector<16x128xf32>, vector<8x128xf32> -> vector<8x128xf32>
    %c0_12 = arith.constant 0 : index
    %c0_13 = arith.constant 0 : index
    %14 = vector.load %arg6[%c0_12, %c0_13] : memref<32x128xf32, #tpu.memory_space<vmem>>, vector<32x128xf32>
    %cst_14 = arith.constant dense<0.000000e+00> : vector<8x128xf32>
    %15 = tpu.matmul %9, %14, %cst_14 {dimension_numbers = #tpu.dot_dimension_numbers<[1], [0], [0], [1], [0, 0, 1, 1], [], []>} : vector<8x32xf32>, vector<32x128xf32>, vector<8x128xf32> -> vector<8x128xf32>
    %16 = arith.addf %13, %15 : vector<8x128xf32>
    %c0_15 = arith.constant 0 : index
    %c0_16 = arith.constant 0 : index
    %17 = vector.load %arg7[%c0_15, %c0_16] : memref<1x128xf32, #tpu.memory_space<vmem>>, vector<1x128xf32>
    %18 = vector.broadcast %17 : vector<1x128xf32> to vector<8x128xf32>
    %19 = arith.addf %16, %18 : vector<8x128xf32>
    %20 = arith.negf %19 : vector<8x128xf32>
    %21 = math.exp %20 : vector<8x128xf32>
    %cst_17 = arith.constant 1.000000e+00 : f32
    %22 = vector.broadcast %cst_17 : f32 to vector<8x128xf32>
    %23 = arith.addf %22, %21 : vector<8x128xf32>
    %24 = arith.divf %22, %23 : vector<8x128xf32>
    %25 = math.tanh %19 : vector<8x128xf32>
    %26 = vector.extract_strided_slice %24 {offsets = [0, 0], sizes = [8, 32], strides = [1, 1]} : vector<8x128xf32> to vector<8x32xf32>
    %27 = vector.extract_strided_slice %24 {offsets = [0, 32], sizes = [8, 32], strides = [1, 1]} : vector<8x128xf32> to vector<8x32xf32>
    %28 = vector.extract_strided_slice %25 {offsets = [0, 64], sizes = [8, 32], strides = [1, 1]} : vector<8x128xf32> to vector<8x32xf32>
    %29 = vector.extract_strided_slice %24 {offsets = [0, 96], sizes = [8, 32], strides = [1, 1]} : vector<8x128xf32> to vector<8x32xf32>
    %30 = arith.mulf %27, %11 : vector<8x32xf32>
    %31 = arith.mulf %26, %28 : vector<8x32xf32>
    %32 = arith.addf %30, %31 : vector<8x32xf32>
    %33 = math.tanh %32 : vector<8x32xf32>
    %34 = arith.mulf %29, %33 : vector<8x32xf32>
    %c1 = arith.constant 1 : index
    %c0_18 = arith.constant 0 : index
    %c0_19 = arith.constant 0 : index
    %35 = vector.load %arg3[%c1, %c0_18, %c0_19] : memref<2x8x32xf32, #tpu.memory_space<vmem>>, vector<1x8x32xf32>
    %36 = vector.shape_cast %35 : vector<1x8x32xf32> to vector<8x32xf32>
    %c1_20 = arith.constant 1 : index
    %c0_21 = arith.constant 0 : index
    %c0_22 = arith.constant 0 : index
    %37 = vector.load %arg4[%c1_20, %c0_21, %c0_22] : memref<2x8x32xf32, #tpu.memory_space<vmem>>, vector<1x8x32xf32>
    %38 = vector.shape_cast %37 : vector<1x8x32xf32> to vector<8x32xf32>
    %c0_23 = arith.constant 0 : index
    %c0_24 = arith.constant 0 : index
    %39 = vector.load %arg8[%c0_23, %c0_24] : memref<32x128xf32, #tpu.memory_space<vmem>>, vector<32x128xf32>
    %cst_25 = arith.constant dense<0.000000e+00> : vector<8x128xf32>
    %40 = tpu.matmul %34, %39, %cst_25 {dimension_numbers = #tpu.dot_dimension_numbers<[1], [0], [0], [1], [0, 0, 1, 1], [], []>} : vector<8x32xf32>, vector<32x128xf32>, vector<8x128xf32> -> vector<8x128xf32>
    %c0_26 = arith.constant 0 : index
    %c0_27 = arith.constant 0 : index
    %41 = vector.load %arg9[%c0_26, %c0_27] : memref<32x128xf32, #tpu.memory_space<vmem>>, vector<32x128xf32>
    %cst_28 = arith.constant dense<0.000000e+00> : vector<8x128xf32>
    %42 = tpu.matmul %36, %41, %cst_28 {dimension_numbers = #tpu.dot_dimension_numbers<[1], [0], [0], [1], [0, 0, 1, 1], [], []>} : vector<8x32xf32>, vector<32x128xf32>, vector<8x128xf32> -> vector<8x128xf32>
    %43 = arith.addf %40, %42 : vector<8x128xf32>
    %c0_29 = arith.constant 0 : index
    %c0_30 = arith.constant 0 : index
    %44 = vector.load %arg10[%c0_29, %c0_30] : memref<1x128xf32, #tpu.memory_space<vmem>>, vector<1x128xf32>
    %45 = vector.broadcast %44 : vector<1x128xf32> to vector<8x128xf32>
    %46 = arith.addf %43, %45 : vector<8x128xf32>
    %47 = arith.negf %46 : vector<8x128xf32>
    %48 = math.exp %47 : vector<8x128xf32>
    %cst_31 = arith.constant 1.000000e+00 : f32
    %49 = vector.broadcast %cst_31 : f32 to vector<8x128xf32>
    %50 = arith.addf %49, %48 : vector<8x128xf32>
    %51 = arith.divf %49, %50 : vector<8x128xf32>
    %52 = math.tanh %46 : vector<8x128xf32>
    %53 = vector.extract_strided_slice %51 {offsets = [0, 0], sizes = [8, 32], strides = [1, 1]} : vector<8x128xf32> to vector<8x32xf32>
    %54 = vector.extract_strided_slice %51 {offsets = [0, 32], sizes = [8, 32], strides = [1, 1]} : vector<8x128xf32> to vector<8x32xf32>
    %55 = vector.extract_strided_slice %52 {offsets = [0, 64], sizes = [8, 32], strides = [1, 1]} : vector<8x128xf32> to vector<8x32xf32>
    %56 = vector.extract_strided_slice %51 {offsets = [0, 96], sizes = [8, 32], strides = [1, 1]} : vector<8x128xf32> to vector<8x32xf32>
    %57 = arith.mulf %54, %38 : vector<8x32xf32>
    %58 = arith.mulf %53, %55 : vector<8x32xf32>
    %59 = arith.addf %57, %58 : vector<8x32xf32>
    %60 = math.tanh %59 : vector<8x32xf32>
    %61 = arith.mulf %56, %60 : vector<8x32xf32>
    %62 = vector.shape_cast %34 : vector<8x32xf32> to vector<1x8x32xf32>
    %63 = vector.shape_cast %61 : vector<8x32xf32> to vector<1x8x32xf32>
    %64 = tpu.concatenate %62, %63 in 0 : vector<1x8x32xf32>, vector<1x8x32xf32> -> vector<2x8x32xf32>
    %c0_32 = arith.constant 0 : index
    %c0_33 = arith.constant 0 : index
    %c0_34 = arith.constant 0 : index
    %65 = vector.load %arg14[%c0_32, %c0_33, %c0_34] : memref<2x8x32xf32, #tpu.memory_space<vmem>>, vector<2x8x32xf32>
    tpu.vector_store %arg14[%c0_32, %c0_33, %c0_34], %64 {strides = array<i32>} : memref<2x8x32xf32, #tpu.memory_space<vmem>>, vector<2x8x32xf32>,
    %66 = vector.shape_cast %32 : vector<8x32xf32> to vector<1x8x32xf32>
    %67 = vector.shape_cast %59 : vector<8x32xf32> to vector<1x8x32xf32>
    %68 = tpu.concatenate %66, %67 in 0 : vector<1x8x32xf32>, vector<1x8x32xf32> -> vector<2x8x32xf32>
    %c0_35 = arith.constant 0 : index
    %c0_36 = arith.constant 0 : index
    %c0_37 = arith.constant 0 : index
    %69 = vector.load %arg15[%c0_35, %c0_36, %c0_37] : memref<2x8x32xf32, #tpu.memory_space<vmem>>, vector<2x8x32xf32>
    tpu.vector_store %arg15[%c0_35, %c0_36, %c0_37], %68 {strides = array<i32>} : memref<2x8x32xf32, #tpu.memory_space<vmem>>, vector<2x8x32xf32>,
    %c0_38 = arith.constant 0 : index
    %c0_39 = arith.constant 0 : index
    %70 = vector.load %arg11[%c0_38, %c0_39] : memref<32x32xf32, #tpu.memory_space<vmem>>, vector<32x32xf32>
    %cst_40 = arith.constant dense<0.000000e+00> : vector<8x32xf32>
    %71 = tpu.matmul %61, %70, %cst_40 {dimension_numbers = #tpu.dot_dimension_numbers<[1], [0], [0], [1], [0, 0, 1, 1], [], []>} : vector<8x32xf32>, vector<32x32xf32>, vector<8x32xf32> -> vector<8x32xf32>
    %c0_41 = arith.constant 0 : index
    %c0_42 = arith.constant 0 : index
    %72 = vector.load %arg12[%c0_41, %c0_42] : memref<1x32xf32, #tpu.memory_space<vmem>>, vector<1x32xf32>
    %73 = vector.broadcast %72 : vector<1x32xf32> to vector<8x32xf32>
    %74 = arith.addf %71, %73 : vector<8x32xf32>
    %c0_43 = arith.constant 0 : index
    %c0_44 = arith.constant 0 : index
    %75 = vector.load %arg13[%c0_43, %c0_44] : memref<8x32xf32, #tpu.memory_space<vmem>>, vector<8x32xf32>
    tpu.vector_store %arg13[%c0_43, %c0_44], %74 {strides = array<i32>} : memref<8x32xf32, #tpu.memory_space<vmem>>, vector<8x32xf32>,
    return
  }
  func.func @transform_0(%arg0: i32) -> (i32, i32) {
    %c0_i32 = arith.constant 0 : i32
    %c0_i32_0 = arith.constant 0 : i32
    %c0_i32_1 = arith.constant 0 : i32
    return %c0_i32, %c0_i32_0 : i32, i32
  }
  func.func @transform_1(%arg0: i32) -> (i32, i32) {
    %c0_i32 = arith.constant 0 : i32
    %c0_i32_0 = arith.constant 0 : i32
    %c0_i32_1 = arith.constant 0 : i32
    return %c0_i32, %c0_i32_0 : i32, i32
  }
  func.func @transform_2(%arg0: i32) -> (i32, i32, i32) {
    %c0_i32 = arith.constant 0 : i32
    %c0_i32_0 = arith.constant 0 : i32
    %c0_i32_1 = arith.constant 0 : i32
    %c0_i32_2 = arith.constant 0 : i32
    return %c0_i32, %c0_i32_0, %c0_i32_1 : i32, i32, i32
  }
  func.func @transform_3(%arg0: i32) -> (i32, i32, i32) {
    %c0_i32 = arith.constant 0 : i32
    %c0_i32_0 = arith.constant 0 : i32
    %c0_i32_1 = arith.constant 0 : i32
    %c0_i32_2 = arith.constant 0 : i32
    return %c0_i32, %c0_i32_0, %c0_i32_1 : i32, i32, i32
  }
  func.func @transform_4(%arg0: i32) -> (i32, i32) {
    %c0_i32 = arith.constant 0 : i32
    %c0_i32_0 = arith.constant 0 : i32
    %c0_i32_1 = arith.constant 0 : i32
    return %c0_i32, %c0_i32_0 : i32, i32
  }
  func.func @transform_5(%arg0: i32) -> (i32, i32) {
    %c0_i32 = arith.constant 0 : i32
    %c0_i32_0 = arith.constant 0 : i32
    %c0_i32_1 = arith.constant 0 : i32
    return %c0_i32, %c0_i32_0 : i32, i32
  }
  func.func @transform_6(%arg0: i32) -> (i32, i32) {
    %c0_i32 = arith.constant 0 : i32
    %c0_i32_0 = arith.constant 0 : i32
    %c0_i32_1 = arith.constant 0 : i32
    return %c0_i32, %c0_i32_0 : i32, i32
  }
  func.func @transform_7(%arg0: i32) -> (i32, i32) {
    %c0_i32 = arith.constant 0 : i32
    %c0_i32_0 = arith.constant 0 : i32
    %c0_i32_1 = arith.constant 0 : i32
    return %c0_i32, %c0_i32_0 : i32, i32
  }
  func.func @transform_8(%arg0: i32) -> (i32, i32) {
    %c0_i32 = arith.constant 0 : i32
    %c0_i32_0 = arith.constant 0 : i32
    %c0_i32_1 = arith.constant 0 : i32
    return %c0_i32, %c0_i32_0 : i32, i32
  }
  func.func @transform_9(%arg0: i32) -> (i32, i32) {
    %c0_i32 = arith.constant 0 : i32
    %c0_i32_0 = arith.constant 0 : i32
    %c0_i32_1 = arith.constant 0 : i32
    return %c0_i32, %c0_i32_0 : i32, i32
  }
  func.func @transform_10(%arg0: i32) -> (i32, i32) {
    %c0_i32 = arith.constant 0 : i32
    %c0_i32_0 = arith.constant 0 : i32
    %c0_i32_1 = arith.constant 0 : i32
    return %c0_i32, %c0_i32_0 : i32, i32
  }
  func.func @transform_11(%arg0: i32) -> (i32, i32) {
    %c0_i32 = arith.constant 0 : i32
    %c0_i32_0 = arith.constant 0 : i32
    %c0_i32_1 = arith.constant 0 : i32
    return %c0_i32, %c0_i32_0 : i32, i32
  }
  func.func @transform_12(%arg0: i32) -> (i32, i32) {
    %c0_i32 = arith.constant 0 : i32
    %c0_i32_0 = arith.constant 0 : i32
    %c0_i32_1 = arith.constant 0 : i32
    return %c0_i32, %c0_i32_0 : i32, i32
  }
  func.func @transform_13(%arg0: i32) -> (i32, i32, i32) {
    %c0_i32 = arith.constant 0 : i32
    %c0_i32_0 = arith.constant 0 : i32
    %c0_i32_1 = arith.constant 0 : i32
    %c0_i32_2 = arith.constant 0 : i32
    return %c0_i32, %c0_i32_0, %c0_i32_1 : i32, i32, i32
  }
  func.func @transform_14(%arg0: i32) -> (i32, i32, i32) {
    %c0_i32 = arith.constant 0 : i32
    %c0_i32_0 = arith.constant 0 : i32
    %c0_i32_1 = arith.constant 0 : i32
    %c0_i32_2 = arith.constant 0 : i32
    return %c0_i32, %c0_i32_0, %c0_i32_1 : i32, i32, i32
  }
}

</mosaic_0001>

<bundles_post_ra>
// kernel: tpu_custom_call.1
= control target key start
LH: loop header
LB: loop body
LE: loop exit
PB: predicated region body
PF: predicated region fallthrough
CT: control target
= control target key end

     0   :  { %20 = vsyncpa [#allocation3], 0  ;;  %s1406_s0 = inlined_call_operand.vmem [shape: s32[8,1], index: 0, kind: input, shape index: {}]   ;;  %s1407_s1 = inlined_call_operand.vmem [shape: f32[32,16], index: 1, kind: input, shape index: {}]   ;;  %s1408_s2 = inlined_call_operand.hbm [shape: f32[2,8,32], index: 2, kind: input, shape index: {}, may-alias: {2,13}]   ;;  %s1409_s3 = inlined_call_operand.hbm [shape: f32[2,8,32], index: 3, kind: input, shape index: {}, may-alias: {3,14}]   ;;  %s1410_s4 = inlined_call_operand.vmem [shape: f32[16,128], index: 4, kind: input, shape index: {}]   ;;  %s1411_s5 = inlined_call_operand.vmem [shape: f32[32,128], index: 5, kind: input, shape index: {}]   ;;  %s1412_s6 = inlined_call_operand.vmem [shape: f32[1,128], index: 6, kind: input, shape index: {}]   ;;  %s1413_s7 = inlined_call_operand.vmem [shape: f32[32,128], index: 7, kind: input, shape index: {}]   ;;  %s1414_s8 = inlined_call_operand.vmem [shape: f32[32,128], index: 8, kind: input, shape index: {}]   ;;  %s1415_s9 = inlined_call_operand.hbm [shape: f32[1,128], index: 9, kind: input, shape index: {}]   ;;  %s1416_s10 = inlined_call_operand.hbm [shape: f32[32,32], index: 10, kind: input, shape index: {}]   ;;  %s1417_s11 = inlined_call_operand.hbm [shape: f32[1,32], index: 11, kind: input, shape index: {}]   ;;  %s1418_s12 = inlined_call_operand.hbm [shape: f32[8,32], index: 12, kind: output, shape index: {0}]   ;;  %s1419_s13 = inlined_call_operand.hbm [shape: f32[2,8,32], index: 13, kind: output, shape index: {1}, may-alias: {2,13}]   ;;  %s1420_s14 = inlined_call_operand.hbm [shape: f32[2,8,32], index: 14, kind: output, shape index: {2}, may-alias: {3,14}]  }
   0x1   :  { %21 = vsyncpa [#allocation6], 0 }
   0x2   :  { %22 = vsyncpa [#allocation9], 0 }
   0x3   :  { %23 = vsyncpa [#allocation4], 0 }
   0x4   :  { %24 = vsyncpa [#allocation13], 0  ;;  %s1088_s29 = smov [#allocation5]   ;;  %s1089_s15 = smov [#allocation8]  }
   0x5   :  { %s46_s30 = sshll.u32 %s1088_s29, 4  ;;  %s78_s16 = sshll.u32 %s1089_s15, 4  ;;  %s47_s30 = int_to_ptr.vmem [resolvable:$true] %s46_s30  ;;  %s1180_s16 = int_to_ptr.vmem [resolvable:$true] %s78_s16 }
   0x6   :  { %s902_s19 = scalar_lea.hbm %s1409_s3, 256 }
   0x7   :  { %p903_p0 = scmp.ne.s32.totalorder %s1409_s3, %s902_s19  ;;  %p906_p1 = scmp.lt.u32.totalorder %s902_s19, %s1409_s3 }
   0x9   :  { %p908_p2 = pnand %p906_p1, %p903_p0 }
   0xb   :  { %911 = shalt.err (!%p908_p2)
}
   0xc   :  { %s912_s24 = scalar_lea.vmem %s47_s30, 256  ;;  %p917_p4 = scmp.lt.s32.totalorder %s47_s30, %s47_s30 }
   0xd   :  { %p913_p3 = scmp.ne.s32.totalorder %s47_s30, %s912_s24  ;;  %p918_p5 = scmp.lt.s32.totalorder %s912_s24, %s912_s24 }
   0xf   :  { %p919_p6 = por %p918_p5, %p917_p4 }
  0x11   :  { %p920_p7 = pnand %p919_p6, %p913_p3 }
  0x13   :  { %923 = shalt.err (!%p920_p7)
}
  0x14   :  { %s1090_s25 = smov 128   ;;  %s1091_s26 = smov 8  }
  0x15   :  { %52 = dma.hbm_to_vmem [thread:$0]  %s1409_s3, 256, %s47_s30, [#allocation6], %s1090_s25, %s1090_s25, %s1091_s26  }
  0x16   :  { %s924_s17 = scalar_lea.hbm %s1416_s10, 512 }
  0x17   :  { %p925_p8 = scmp.ne.s32.totalorder %s1416_s10, %s924_s17  ;;  %p928_p9 = scmp.lt.u32.totalorder %s924_s17, %s1416_s10 }
  0x19   :  { %p930_p10 = pnand %p928_p9, %p925_p8 }
  0x1b   :  { %933 = shalt.err (!%p930_p10)
}
  0x1c   :  { %s934_s22 = scalar_lea.vmem %s1180_s16, 512  ;;  %p939_p12 = scmp.lt.s32.totalorder %s1180_s16, %s1180_s16 }
  0x1d   :  { %p935_p11 = scmp.ne.s32.totalorder %s1180_s16, %s934_s22  ;;  %p940_p13 = scmp.lt.s32.totalorder %s934_s22, %s934_s22 }
  0x1f   :  { %p941_p0 = por %p940_p13, %p939_p12 }
  0x21   :  { %p942_p1 = pnand %p941_p0, %p935_p11 }
  0x23   :  { %945 = shalt.err (!%p942_p1)
}
  0x24   :  { %84 = dma.hbm_to_vmem [thread:$0]  %s1416_s10, 512, %s1180_s16, [#allocation9], %s1090_s25, %s1090_s25, %s1091_s26  }
  0x25   :  { %s1092_s23 = smov [#allocation2]   ;;  %s1093_s27 = smov [#allocation7]  }
  0x26   :  { %s34_s24 = sshll.u32 %s1092_s23, 4  ;;  %s69_s28 = sshll.u32 %s1093_s27, 4  ;;  %s35_s24 = int_to_ptr.vmem [resolvable:$true] %s34_s24  ;;  %s70_s28 = int_to_ptr.vmem [resolvable:$true] %s69_s28 }
  0x27   :  { %s946_s17 = scalar_lea.hbm %s1408_s2, 256 }
  0x28   :  { %p947_p2 = scmp.ne.s32.totalorder %s1408_s2, %s946_s17  ;;  %p950_p3 = scmp.lt.u32.totalorder %s946_s17, %s1408_s2 }
  0x2a   :  { %p952_p4 = pnand %p950_p3, %p947_p2 }
  0x2c   :  { %955 = shalt.err (!%p952_p4)
}
  0x2d   :  { %s956_s10 = scalar_lea.vmem %s35_s24, 256  ;;  %p961_p6 = scmp.lt.s32.totalorder %s35_s24, %s35_s24 }
  0x2e   :  { %p957_p5 = scmp.ne.s32.totalorder %s35_s24, %s956_s10  ;;  %p962_p7 = scmp.lt.s32.totalorder %s956_s10, %s956_s10 }
  0x30   :  { %p963_p8 = por %p962_p7, %p961_p6 }
  0x32   :  { %p964_p9 = pnand %p963_p8, %p957_p5 }
  0x34   :  { %967 = shalt.err (!%p964_p9)
}
  0x35   :  { %40 = dma.hbm_to_vmem [thread:$0]  %s1408_s2, 256, %s35_s24, [#allocation3], %s1090_s25, %s1090_s25, %s1091_s26  }
  0x36   :  { %s968_s23 = scalar_lea.hbm %s1415_s9, 16 }
  0x37   :  { %p969_p10 = scmp.ne.s32.totalorder %s1415_s9, %s968_s23  ;;  %p972_p11 = scmp.lt.u32.totalorder %s968_s23, %s1415_s9 }
  0x39   :  { %p974_p12 = pnand %p972_p11, %p969_p10 }
  0x3b   :  { %977 = shalt.err (!%p974_p12)
}
  0x3c   :  { %s978_s18 = scalar_lea.vmem %s70_s28, 16  ;;  %s982_s19 = scalar_lea.vmem %s70_s28, 32 }
  0x3d   :  { %p979_p13 = scmp.ne.s32.totalorder %s70_s28, %s978_s18  ;;  %p983_p0 = scmp.lt.s32.totalorder %s70_s28, %s70_s28 }
  0x3e   :  { %p984_p1 = scmp.lt.s32.totalorder %s982_s19, %s978_s18 }
  0x40   :  { %p985_p2 = por %p984_p1, %p983_p0 }
  0x42   :  { %p986_p3 = pnand %p985_p2, %p979_p13 }
  0x44   :  { %989 = shalt.err (!%p986_p3)
}
  0x45   :  { %72 = dma.hbm_to_vmem [thread:$0]  %s1415_s9, 16, %s70_s28, [#allocation6]  }
  0x46   :  { %s1094_s20 = smov [#allocation10]   ;;  %s990_s22 = scalar_lea.hbm %s1417_s11, 16 }
  0x47   :  { %s91_s21 = sshll.u32 %s1094_s20, 4  ;;  %p991_p4 = scmp.ne.s32.totalorder %s1417_s11, %s990_s22  ;;  %s92_s21 = int_to_ptr.vmem [resolvable:$true] %s91_s21 }
  0x48   :  { %p994_p5 = scmp.lt.u32.totalorder %s990_s22, %s1417_s11 }
  0x4a   :  { %p996_p6 = pnand %p994_p5, %p991_p4 }
  0x4c   :  { %999 = shalt.err (!%p996_p6)
}
  0x4d   :  { %s1000_s29 = scalar_lea.vmem %s92_s21, 16  ;;  %s1004_s9 = scalar_lea.vmem %s92_s21, 32 }
  0x4e   :  { %p1001_p7 = scmp.ne.s32.totalorder %s92_s21, %s1000_s29  ;;  %p1005_p8 = scmp.lt.s32.totalorder %s92_s21, %s92_s21 }
  0x4f   :  { %p1006_p9 = scmp.lt.s32.totalorder %s1004_s9, %s1000_s29 }
  0x51   :  { %p1007_p10 = por %p1006_p9, %p1005_p8 }
  0x53   :  { %p1008_p11 = pnand %p1007_p10, %p1001_p7 }
  0x55   :  { %1011 = shalt.err (!%p1008_p11)
}
  0x56   :  { %94 = dma.hbm_to_vmem [thread:$0]  %s1417_s11, 16, %s92_s21, [#allocation9]  }
  0x57   :  { %1078 = dma.done.wait [#allocation3], 256  }
  0x58   :  { %1079 = vsyncadd [#allocation3], 4294967040 }
  0x59   :  { %1080 = dma.done.wait [#allocation6], 272  }
  0x5a   :  { %1081 = vsyncadd [#allocation6], 4294967024 }
  0x5b   :  { %1082 = dma.done.wait [#allocation9], 528  }
  0x5c   :  { %1083 = vsyncadd [#allocation9], 4294966768  ;;  %v1095_v0 = vmov 0   ;;  %v1096_v1 = vmov 0.0|0.0   ;;  %v110_v2 = vld [vmem:[%s1406_s0] sm:$0xff]  ;;  %v120_v4 = vld [vmem:[%s1407_s1 + $0x8] sm:$0xff]  ;;  %v111_v16 = vlaneseq }
  0x5d   :  { %885 = vset.pattern.permute.xlu0 %v1095_v0  ;;  %835 = vmatprep.subr.bf16.mxu0 %v1096_v1  ;;  %v119_v3 = vld [vmem:[%s1407_s1] sm:$0xff]  ;;  %v121_v6 = vld [vmem:[%s1407_s1 + $0x10] sm:$0xff]  ;;  %v122_v7 = vld [vmem:[%s1407_s1 + $0x18] sm:$0xff]  ;;  %vm1097_vm0 = vmmov 0   ;;  %v1098_v8 = vmov 0.0   ;;  %vm123_vm1 = vcmask 261120  }
  0x5e   :  { %841 = vmatprep.subr.bf16.mxu1 %v1096_v1  ;;  %114 = vperm.xlu0 %885, %v110_v2   ;;  %v836_v5 = vpack.c.bf16 %v120_v4, %v119_v3  ;;  %v839_v9 = vpack.c.bf16 %v122_v7, %v121_v6  ;;  %v201_v10 = vld [vmem:[%s1411_s5] sm:$0xff]  ;;  %v202_v11 = vld [vmem:[%s1411_s5 + $0x8] sm:$0xff]  ;;  %v203_v12 = vld [vmem:[%s1411_s5 + $0x10] sm:$0xff]  ;;  %v112_v17 = vand.u32 127, %v111_v16  ;;  %vm278_vm3 = vcmask 130048   ;;  %s1100_s19 = smov 64  }
  0x5f   :  { %781 = vmatprep.mubr.msk.f32.mxu0 %vm1097_vm0, %v1098_v8  ;;  %792 = vmatprep.mubr.msk.f32.mxu1 %vm1097_vm0, %v1098_v8  ;;  %v842_v13 = vpack.c.bf16 %v202_v11, %v201_v10  ;;  %v204_v14 = vld [vmem:[%s1411_s5 + $0x18] sm:$0xff]  ;;  %v199_v18 = vld [vmem:[%s1410_s4] sm:$0xff]  ;;  %v200_v19 = vld [vmem:[%s1410_s4 + $0x8] sm:$0xff]  ;;  %s1099_s4 = smov 32  }
  0x60   :  { %837 = vmatpush3.bf16.msra.mxu0 %v836_v5  ;;  %v845_v15 = vpack.c.bf16 %v204_v14, %v203_v12  ;;  %v848_v21 = vpack.c.bf16 %v200_v19, %v199_v18  ;;  %v197_v23 = vld [vmem:[#allocation2] sm:$0xff]  ;;  %v198_v24 = vld [vmem:[#allocation5] sm:$0xff]  ;;  %v397_v46 = vld [vmem:[%s1414_s8 + $0x8] sm:$0xff] }
  0x61   :  { %838 = vmatprep.subr.bf16.mxu0 %v1096_v1  ;;  %843 = vmatpush3.bf16.msra.mxu1 %v842_v13  ;;  %v737_v30 = vld [vmem:[%s1412_s6] ss:$0 sm:$0xff]  ;;  %v393_v49 = vld [vmem:[%s1413_s7 + $0x8] sm:$0xff]  ;;  %v398_v50 = vld [vmem:[%s1414_s8 + $0x10] sm:$0xff] }
  0x62   :  { %844 = vmatprep.subr.bf16.mxu1 %v1096_v1  ;;  %368 = vrot.lane.b32.xlu1 %v198_v24, %s1099_s4  ;;  %v396_v45 = vld [vmem:[%s1414_s8] sm:$0xff]  ;;  %v399_v51 = vld [vmem:[%s1414_s8 + $0x18] sm:$0xff]  ;;  %v394_v53 = vld [vmem:[%s1413_s7 + $0x10] sm:$0xff]  ;;  %s1102_s8 = smov [#allocation12]  }
  0x63   :  { %v392_v47 = vld [vmem:[%s1413_s7] sm:$0xff]  ;;  %v851_v48 = vpack.c.bf16 %v397_v46, %v396_v45  ;;  %v395_v54 = vld [vmem:[%s1413_s7 + $0x18] sm:$0xff]  ;;  %v854_v55 = vpack.c.bf16 %v399_v51, %v398_v50  ;;  %v389_v57 = vld [vmem:[#allocation2 + $0x8] sm:$0xff]  ;;  %s1101_s7 = smov 96   ;;  %s700_s9 = sshll.u32 %s1102_s8, 4  ;;  %s701_s9 = int_to_ptr.vmem [resolvable:$true] %s700_s9 }
  0x64   :  { %840 = vmatpush3.bf16.msra.mxu0 %v839_v9  ;;  %v857_v52 = vpack.c.bf16 %v393_v49, %v392_v47  ;;  %v860_v56 = vpack.c.bf16 %v395_v54, %v394_v53  ;;  %v391_v61 = vld [vmem:[#allocation5 + $0x8] sm:$0xff]  ;;  %v741_v3 = vld [vmem:[#allocation7] ss:$0 sm:$0xff]  ;;  %v601_v18 = vld [vmem:[#allocation8] sm:$0xff]  ;;  %s1012_s28 = scalar_lea.vmem %s701_s9, 256  ;;  %p1017_p13 = scmp.lt.s32.totalorder %s701_s9, %s701_s9 }
  0x65   :  { %847 = vmatprep.subr.bf16.mxu0 %v1096_v1  ;;  %846 = vmatpush3.bf16.msra.mxu1 %v845_v15  ;;  %v602_v19 = vld [vmem:[#allocation8 + $0x8] sm:$0xff]  ;;  %p1013_p12 = scmp.ne.s32.totalorder %s701_s9, %s1012_s28  ;;  %p1018_p0 = scmp.lt.s32.totalorder %s1012_s28, %s1012_s28 }
  0x66   :  { %850 = vmatprep.subr.bf16.mxu1 %v1096_v1 }
  0x67   :  { %p1019_p1 = por %p1018_p0, %p1017_p13 }
  0x68   :  { %793 = vmatmul.mubr.msk.f32.vlgmr.msra.gmra.mrb[0].mxu1 %vm123_vm1, %v197_v23 }
  0x69   :  { %810 = vmatprep.mubr.msk.f32.mxu1 %vm1097_vm0, %v1098_v8  ;;  %852 = vmatpush3.bf16.msra.mxu1 %v851_v48  ;;  %p1020_p2 = pnand %p1019_p1, %p1013_p12 }
  0x6a   :  { %853 = vmatprep.subr.bf16.mxu1 %v1096_v1 }
  0x6d   :  { %855 = vmatpush3.bf16.msra.mxu1 %v854_v55 }
  0x6e   :  { %862 = vmatprep.subr.bf16.mxu1 %v1096_v1 }
  0x70   :  { %811 = vmatmul.mubr.msk.f32.vlgmr.msra.gmra.mrb[2].mxu1 %vm123_vm1, %v389_v57 }
  0x71   :  { %832 = vmatprep.mubr.msk.f32.mxu1 %vm1097_vm0, %v1098_v8 }
  0xd4   :  { %v369_v41 = vpop.permute.xlu1 %368 }
  0xdd   :  { %v115_v20 = vpop.permute.xlu0 %114 }
  0xde   :  { %vm116_vm2 = vcmp.eq.s32.totalorder %v112_v17, %v115_v20  ;;  %v603_v20 = vld [vmem:[#allocation8 + $0x10] sm:$0xff] }
  0xdf   :  { %v733_v22 = vsel %vm116_vm2, 1.0, %v1098_v8 }
  0xe0   :  { %782 = vmatmul.mubr.msk.f32.vlgmr.msra.gmra.mrb[0].mxu0 %vm123_vm1, %v733_v22  ;;  %v604_v22 = vld [vmem:[#allocation8 + $0x18] sm:$0xff] }
  0xe1   :  { %849 = vmatpush3.bf16.msra.mxu0 %v848_v21  ;;  %799 = vmatprep.mubr.msk.f32.mxu0 %vm1097_vm0, %v1098_v8  ;;  %v863_v21 = vpack.c.bf16 %v602_v19, %v601_v18  ;;  %v866_v23 = vpack.c.bf16 %v604_v22, %v603_v20 }
  0xe2   :  { %856 = vmatprep.subr.bf16.mxu0 %v1096_v1 }
  0xe3   :  { %864 = vmatpush3.bf16.msra.mxu1 %v863_v21 }
  0xe4   :  { %865 = vmatprep.subr.bf16.mxu1 %v1096_v1 }
  0xe7   :  { %867 = vmatpush3.bf16.msra.mxu1 %v866_v23 }
 0x13b   :  { %v274_v27 = vpop.f32.mrb[0].mxu1 }
 0x13c   :  { %v794_v28 = vpop.f32.mrb[1].mxu1 }
 0x143   :  { %v469_v62 = vpop.f32.mrb[2].mxu1 }
 0x144   :  { %v812_v63 = vpop.f32.mrb[3].mxu1 }
 0x1b3   :  { %v193_v25 = vpop.f32.mrb[0].mxu0 }
 0x1b4   :  { %v783_v26 = vpop.f32.mrb[1].mxu0  ;;  %800 = vmatmul.mubr.msk.f32.vlgmr.msra.gmra.mrb[2].mxu0 %vm278_vm3, %v193_v25 }
 0x1b5   :  { %821 = vmatprep.mubr.msk.f32.mxu0 %vm1097_vm0, %v1098_v8  ;;  %858 = vmatpush3.bf16.msra.mxu0 %v857_v52 }
 0x1b6   :  { %859 = vmatprep.subr.bf16.mxu0 %v1096_v1 }
 0x1b9   :  { %861 = vmatpush3.bf16.msra.mxu0 %v860_v56 }
 0x287   :  { %v348_v29 = vpop.f32.mrb[2].mxu0 }
 0x288   :  { %v349_v31 = vadd.f32 %v348_v29, %v274_v27  ;;  %v801_v32 = vpop.f32.mrb[3].mxu0 }
 0x28a   :  { %v359_v33 = vadd.f32 %v737_v30, %v349_v31 }
 0x28c   :  { %886 = vtanh.f32 %v359_v33  ;;  %v738_v35 = vmul.f32 -1.442695, %v359_v33 }
 0x28e   :  { %888 = vpow2.f32 %v738_v35 }
 0x296   :  { %v887_v34 = vpop.eup %886 }
 0x297   :  { %373 = vrot.lane.b32.xlu0 %v887_v34, %s1100_s19 }
 0x298   :  { %v889_v36 = vpop.eup %888 }
 0x299   :  { %v363_v37 = vadd.f32 1.0, %v889_v36 }
 0x29b   :  { %890 = vrcp.f32 %v363_v37 }
 0x2a5   :  { %v891_v38 = vpop.eup %890 }
 0x2a6   :  { %v371_v42 = vmul.f32 %v891_v38, %v369_v41 }
 0x309   :  { %v374_v39 = vpop.permute.xlu0 %373 }
 0x30a   :  { %v376_v40 = vmul.f32 %v891_v38, %v374_v39 }
 0x30c   :  { %378 = vrot.lane.b32.xlu1 %v376_v40, %s1099_s4 }
 0x37e   :  { %v379_v43 = vpop.permute.xlu1 %378 }
 0x37f   :  { %v1315_v44 = vadd.f32 %v379_v43, %v371_v42 }
 0x381   :  { %892 = vtanh.f32 %v1315_v44 }
 0x38b   :  { %v893_v58 = vpop.eup %892 }
 0x38c   :  { %384 = vrot.lane.b32.xlu0 %v893_v58, %s1100_s19 }
 0x3fe   :  { %v385_v59 = vpop.permute.xlu0 %384 }
 0x3ff   :  { %v387_v60 = vmul.f32 %v891_v38, %v385_v59 }
 0x401   :  { %474 = vrot.lane.b32.xlu1 %v387_v60, %s1099_s4 }
 0x405   :  { %564 = vrot.lane.b32.xlu1 %v391_v61, %s1099_s4 }
 0x473   :  { %v475_v0 = vpop.permute.xlu1 %474 }
 0x474   :  { %589 = vst.msk [vmem:[#allocation12] sm:$0xff] %vm123_vm1, %v475_v0  ;;  %822 = vmatmul.mubr.msk.f32.vlgmr.msra.gmra.mrb[4].mxu0 %vm123_vm1, %v475_v0 }
 0x477   :  { %v565_v14 = vpop.permute.xlu1 %564 }
 0x547   :  { %v544_v2 = vpop.f32.mrb[4].mxu0 }
 0x548   :  { %v545_v4 = vadd.f32 %v544_v2, %v469_v62  ;;  %v823_v5 = vpop.f32.mrb[5].mxu0 }
 0x54a   :  { %v555_v6 = vadd.f32 %v741_v3, %v545_v4 }
 0x54c   :  { %894 = vtanh.f32 %v555_v6  ;;  %v742_v8 = vmul.f32 -1.442695, %v555_v6 }
 0x54e   :  { %896 = vpow2.f32 %v742_v8 }
 0x556   :  { %v895_v7 = vpop.eup %894 }
 0x557   :  { %569 = vrot.lane.b32.xlu0 %v895_v7, %s1100_s19 }
 0x558   :  { %v897_v9 = vpop.eup %896 }
 0x559   :  { %v559_v10 = vadd.f32 1.0, %v897_v9 }
 0x55b   :  { %898 = vrcp.f32 %v559_v10 }
 0x565   :  { %v899_v11 = vpop.eup %898 }
 0x566   :  { %v567_v15 = vmul.f32 %v899_v11, %v565_v14 }
 0x5c9   :  { %v570_v12 = vpop.permute.xlu0 %569 }
 0x5ca   :  { %v572_v13 = vmul.f32 %v899_v11, %v570_v12 }
 0x5cc   :  { %574 = vrot.lane.b32.xlu0 %v572_v13, %s1099_s4 }
 0x63e   :  { %v575_v16 = vpop.permute.xlu0 %574 }
 0x63f   :  { %v577_v17 = vadd.f32 %v575_v16, %v567_v15 }
 0x641   :  { %900 = vtanh.f32 %v577_v17 }
 0x64b   :  { %v901_v24 = vpop.eup %900 }
 0x64c   :  { %580 = vrot.lane.b32.xlu1 %v901_v24, %s1100_s19 }
 0x650   :  { %593 = vrot.lane.b32.xlu1 %v1315_v44, %s1101_s7 }
 0x6be   :  { %v581_v25 = vpop.permute.xlu1 %580 }
 0x6bf   :  { %v583_v26 = vmul.f32 %v899_v11, %v581_v25 }
 0x6c1   :  { %585 = vrot.lane.b32.xlu0 %v583_v26, %s1099_s4 }
 0x6c2   :  { %v594_v27 = vpop.permute.xlu1 %593 }
 0x6c3   :  { %599 = vst.msk [vmem:[#allocation14] sm:$0xff] %vm123_vm1, %v594_v27 }
 0x6c5   :  { %595 = vrot.lane.b32.xlu0 %v577_v17, %s1101_s7 }
 0x733   :  { %v586_v28 = vpop.permute.xlu0 %585 }
 0x734   :  { %590 = vst.msk [vmem:[#allocation12 + $0x8] sm:$0xff] %vm123_vm1, %v586_v28  ;;  %833 = vmatmul.mubr.msk.f32.vlgmr.msra.gmra.mrb[4].mxu1 %vm123_vm1, %v586_v28 }
 0x737   :  { %v596_v1 = vpop.permute.xlu0 %595 }
 0x738   :  { %600 = vst.msk [vmem:[#allocation14 + $0x8] sm:$0xff] %vm123_vm1, %v596_v1 }
 0x739   :  { %1023 = shalt.err (!%p1020_p2)
}
 0x73a   :  { %s1024_s4 = scalar_lea.hbm %s1419_s13, 256 }
 0x73b   :  { %p1025_p3 = scmp.ne.s32.totalorder %s1419_s13, %s1024_s4  ;;  %p1028_p4 = scmp.lt.u32.totalorder %s1024_s4, %s1419_s13 }
 0x73d   :  { %p1030_p5 = pnand %p1028_p4, %p1025_p3 }
 0x73f   :  { %1033 = shalt.err (!%p1030_p5)
}
 0x740   :  { %706 = dma.vmem_to_hbm [thread:$0]  %s701_s9, 256, %s1419_s13, [#allocation13], %s1090_s25, %s1090_s25, %s1091_s26  }
 0x741   :  { %s1103_s24 = smov [#allocation14]  }
 0x742   :  { %s712_s20 = sshll.u32 %s1103_s24, 4  ;;  %s713_s20 = int_to_ptr.vmem [resolvable:$true] %s712_s20 }
 0x743   :  { %s1034_s21 = scalar_lea.vmem %s713_s20, 256  ;;  %p1039_p7 = scmp.lt.s32.totalorder %s713_s20, %s713_s20 }
 0x744   :  { %p1035_p6 = scmp.ne.s32.totalorder %s713_s20, %s1034_s21  ;;  %p1040_p8 = scmp.lt.s32.totalorder %s1034_s21, %s1034_s21 }
 0x746   :  { %p1041_p9 = por %p1040_p8, %p1039_p7 }
 0x748   :  { %p1042_p10 = pnand %p1041_p9, %p1035_p6 }
 0x74a   :  { %1045 = shalt.err (!%p1042_p10)
}
 0x74b   :  { %s1046_s0 = scalar_lea.hbm %s1420_s14, 256 }
 0x74c   :  { %p1047_p11 = scmp.ne.s32.totalorder %s1420_s14, %s1046_s0  ;;  %p1050_p12 = scmp.lt.u32.totalorder %s1046_s0, %s1420_s14 }
 0x74e   :  { %p1052_p13 = pnand %p1050_p12, %p1047_p11 }
 0x750   :  { %1055 = shalt.err (!%p1052_p13)
}
 0x751   :  { %718 = dma.vmem_to_hbm [thread:$0]  %s713_s20, 256, %s1420_s14, [#allocation13], %s1090_s25, %s1090_s25, %s1091_s26   ;;  %v743_v29 = vld [vmem:[#allocation10] ss:$0 sm:$0xff] }
 0x752   :  { %s1104_s27 = smov [#allocation11]  }
 0x753   :  { %s691_s29 = sshll.u32 %s1104_s27, 4  ;;  %s692_s29 = int_to_ptr.vmem [resolvable:$true] %s691_s29 }
 0x754   :  { %s1056_s7 = scalar_lea.vmem %s692_s29, 128  ;;  %p1061_p1 = scmp.lt.s32.totalorder %s692_s29, %s692_s29 }
 0x755   :  { %p1057_p0 = scmp.ne.s32.totalorder %s692_s29, %s1056_s7  ;;  %p1062_p2 = scmp.lt.s32.totalorder %s1056_s7, %s1056_s7 }
 0x757   :  { %p1063_p3 = por %p1062_p2, %p1061_p1 }
 0x759   :  { %p1064_p4 = pnand %p1063_p3, %p1057_p0 }
 0x807   :  { %v680_v30 = vpop.f32.mrb[4].mxu1 }
 0x808   :  { %v681_v31 = vadd.f32 %v743_v29, %v680_v30  ;;  %v834_v32 = vpop.f32.mrb[5].mxu1 }
 0x80a   :  { %684 = vst.msk [vmem:[#allocation11] sm:$0xff] %vm123_vm1, %v681_v31 }
 0x80b   :  { %1067 = shalt.err (!%p1064_p4)
}
 0x80c   :  { %s1068_s14 = scalar_lea.hbm %s1418_s12, 128 }
 0x80d   :  { %p1069_p5 = scmp.ne.s32.totalorder %s1418_s12, %s1068_s14  ;;  %p1072_p6 = scmp.lt.u32.totalorder %s1068_s14, %s1418_s12 }
 0x80f   :  { %p1074_p7 = pnand %p1072_p6, %p1069_p5 }
 0x811   :  { %1077 = shalt.err (!%p1074_p7)
}
 0x812   :  { %694 = dma.vmem_to_hbm [thread:$0]  %s692_s29, 128, %s1418_s12, [#allocation4]  }
 0x813   :  { %1084 = dma.done.wait [#allocation4], 128  }
 0x814   :  { %1085 = vsyncadd [#allocation4], 4294967168 }
 0x815   :  { %1086 = dma.done.wait [#allocation13], 512  }
 0x816   :  { %1087 = vsyncadd [#allocation13], 4294966784 }
 0x817   :  { %728 = vsyncpa [#allocation3], 1 }
 0x818   :  { %729 = vsyncpa [#allocation6], 1 }
 0x819   :  { %730 = vsyncpa [#allocation9], 1 }
 0x81a   :  { %731 = vsyncpa [#allocation4], 1 }
 0x81b   :  { %732 = vsyncpa [#allocation13], 1 }

</bundles_post_ra>
